<compile_context>
chip_gen: v7x
topology: tpu7x:2x2x1
jax: 0.10.0
libtpu: 0.0.40
codegen_flags: <defaults>
</compile_context>

<pallas_src>
import jax
import jax.numpy as jnp
from jax.experimental import pallas as pl
from jax.experimental.pallas import tpu as pltpu

LANE = 128


def _make_kernel(C):
    def kernel(bert_ref, lex_ref, syn_ref,
               wb_ref, wl_ref, ws_ref, srep_ref, wc1_ref, wc2_ref, bias_ref,
               out_ref):
        # One f32 accumulation over three small MXU matmuls.  Columns 0:3 of
        # each folded weight carry (W_proj @ wa_slice), so `big` holds the
        # attention logits (cols 0:3) and the three projected features
        # (cols f0:128) in a single lane-dense f32 tile.
        big = (jnp.dot(bert_ref[...], wb_ref[...], preferred_element_type=jnp.float32)
               + jnp.dot(lex_ref[...], wl_ref[...], preferred_element_type=jnp.float32)
               + jnp.dot(syn_ref[...], ws_ref[...], preferred_element_type=jnp.float32)
               + bias_ref[0:1, :])                                  # (tb, 128) f32

        # Softmax over the 3 logit columns; width-3 max / sum done with
        # pairwise column ops (VPU) instead of cross-lane reductions (XLU).
        logits = big[:, 0:3]
        m = jnp.maximum(jnp.maximum(big[:, 0:1], big[:, 1:2]), big[:, 2:3])
        e = jnp.exp(logits - m)
        s = e[:, 0:1] + e[:, 1:2] + e[:, 2:3]
        attn = e / s                                                # (tb, 3) f32

        # Weighted-sum fusion without lane broadcasts: replicate attn_k over
        # its H-wide feature block with one tiny MXU matmul (attn @ S; S is
        # zero over the logit columns), multiply elementwise against `big`,
        # then the classifier matmul against [0; wc1; wc1; wc1] performs the
        # 3-block sum on the MXU as well.
        wfeat = jnp.dot(attn, srep_ref[...],
                        preferred_element_type=jnp.float32) * big   # (tb, 128)

        h = jnp.dot(wfeat, wc1_ref[...],
                    preferred_element_type=jnp.float32) + bias_ref[1:2, :]
        h = jnp.maximum(h, 0.0)                                     # (tb, 128)
        # TODO(synk): nn.Dropout(0.1) is identity here (eval mode only).
        out_ref[...] = (jnp.dot(h, wc2_ref[...],
                                preferred_element_type=jnp.float32)
                        + bias_ref[2:3, 0:C])                       # (tb, C)

    return kernel


def _pick_tile(B):
    # Single grid step for small batches: the grid is a serial loop on 1-TC
    # chips (v5e/v6e) and the ~0.35 us/step overhead dominates tiny tiles.
    # For large batches cap the tile at 512 rows (f32 (tb,128) intermediates
    # stay modest, ~85% of HBM roofline already reached at 512) and keep >= 2
    # "parallel" steps so v7x's 2 TensorCores can split the batch axis.
    if B <= 512:
        return B
    for cand in (512, 256, 128, 64, 32, 16, 8):
        if B % cand == 0:
            return cand
    return B  # odd large batch: single full-array step (always layout-legal)


def feature_attention_fusion(bert, lex, syn, params, *, tile_b=None, training=False):
    if training:
        # TODO(synk): training-mode Dropout(0.1) would need pltpu.prng_seed +
        # pltpu.prng_random_bits masking inside the kernel.
        raise NotImplementedError("only eval-mode (dropout = identity) is implemented")

    wb, bb, wl, bl, ws, bs, wa, ba, wc1, bc1, wc2, bc2 = params
    B = bert.shape[0]
    Db, H = wb.shape
    Dl = wl.shape[0]
    Ds = ws.shape[0]
    F1 = wc1.shape[1]
    C = wc2.shape[1]
    assert 3 * H + 3 <= LANE and F1 <= LANE and C <= LANE
    f0 = LANE - 3 * H  # column offset of the three H-wide projected features

    f32 = jnp.float32
    bert = bert.astype(f32)
    lex = lex.astype(f32)
    syn = syn.astype(f32)

    # ---- one-time wrapper-side weight folding (all f32, zero runtime passes
    #      over the activations) ----
    # attention linear folded through the projections:
    #   logits = concat @ wa + ba = x @ (W_blk @ wa) + (b_cat @ wa + ba)
    wa_b, wa_l, wa_s = wa[0:H], wa[H:2 * H], wa[2 * H:3 * H]

    def fold(w, wa_k, col0):
        m = jnp.zeros((w.shape[0], LANE), f32)
        m = m.at[:, 0:3].set(w @ wa_k)
        return m.at[:, col0:col0 + H].set(w)

    wb_big = fold(wb, wa_b, f0)
    wl_big = fold(wl, wa_l, f0 + H)
    ws_big = fold(ws, wa_s, f0 + 2 * H)

    b_att = bb @ wa_b + bl @ wa_l + bs @ wa_s + ba               # (1, 3)
    bias_pack = jnp.zeros((8, LANE), f32)
    bias_pack = bias_pack.at[0:1, 0:3].set(b_att)
    bias_pack = bias_pack.at[0:1, f0:f0 + H].set(bb)
    bias_pack = bias_pack.at[0:1, f0 + H:f0 + 2 * H].set(bl)
    bias_pack = bias_pack.at[0:1, f0 + 2 * H:LANE].set(bs)
    bias_pack = bias_pack.at[1:2, 0:F1].set(bc1)
    bias_pack = bias_pack.at[2:3, 0:C].set(bc2)

    # 0/1 replication matrix (MXU lane-broadcast of attn) and 3x-stacked wc1.
    srep = jnp.zeros((3, LANE), f32)
    wc1_stk = jnp.zeros((LANE, LANE), f32)
    for k in range(3):
        srep = srep.at[k, f0 + k * H:f0 + (k + 1) * H].set(1.0)
        wc1_stk = wc1_stk.at[f0 + k * H:f0 + (k + 1) * H, 0:F1].set(wc1)
    wc2_c = jnp.zeros((LANE, C), f32).at[0:F1, :].set(wc2)

    tb = _pick_tile(B) if tile_b is None else tile_b
    assert B % tb == 0

    def const(arr):
        return pl.BlockSpec(arr.shape, lambda i: (0, 0))

    grid_spec = pltpu.PrefetchScalarGridSpec(
        num_scalar_prefetch=0,
        grid=(B // tb,),
        in_specs=[
            pl.BlockSpec((tb, Db), lambda i: (i, 0)),   # bert  (batch-tiled)
            pl.BlockSpec((tb, Dl), lambda i: (i, 0)),   # lex
            pl.BlockSpec((tb, Ds), lambda i: (i, 0)),   # syn
            const(wb_big), const(wl_big), const(ws_big),
            const(srep), const(wc1_stk), const(wc2_c), const(bias_pack),
        ],
        out_specs=pl.BlockSpec((tb, C), lambda i: (i, 0)),
    )

    return pl.pallas_call(
        _make_kernel(C),
        out_shape=jax.ShapeDtypeStruct((B, C), f32),
        grid_spec=grid_spec,
        compiler_params=pltpu.CompilerParams(
            dimension_semantics=("parallel",),
            vmem_limit_bytes=32 * 1024 * 1024),
    )(bert, lex, syn, wb_big, wl_big, ws_big, srep, wc1_stk, wc2_c, bias_pack)


def _reference(bert, lex, syn, params):
    wb, bb, wl, bl, ws, bs, wa, ba, wc1, bc1, wc2, bc2 = params
    bert_feat = bert @ wb + bb
    lex_feat = lex @ wl + bl
    syn_feat = syn @ ws + bs
    concat = jnp.concatenate([bert_feat, lex_feat, syn_feat], axis=1)
    logits = concat @ wa + ba
    attn = jax.nn.softmax(logits, axis=1)[:, :, None]            # (B, 3, 1)
    stacked = jnp.stack([bert_feat, lex_feat, syn_feat], axis=1)
    fused = jnp.sum(attn * stacked, axis=1)
    h = jnp.maximum(fused @ wc1 + bc1, 0.0)
    return h @ wc2 + bc2


if __name__ == "__main__":
    # small shapes consistent with the module
    batch, bert_dim, lex_dim, syn_dim, hidden_dim, num_classes = 128, 32, 16, 8, 32, 4

    key = jax.random.PRNGKey(0)
    ks = jax.random.split(key, 16)

    def init(k, shape, scale=0.1):
        return (scale * jax.random.normal(k, shape)).astype(jnp.float32)

    params = (
        init(ks[0], (bert_dim, hidden_dim)), init(ks[1], (1, hidden_dim)),    # bert_proj
        init(ks[2], (lex_dim, hidden_dim)),  init(ks[3], (1, hidden_dim)),    # lex_proj
        init(ks[4], (syn_dim, hidden_dim)),  init(ks[5], (1, hidden_dim)),    # syn_proj
        init(ks[6], (hidden_dim * 3, 3)),    init(ks[7], (1, 3)),             # attention
        init(ks[8], (hidden_dim, 64)),       init(ks[9], (1, 64)),            # classifier[0]
        init(ks[10], (64, num_classes)),     init(ks[11], (1, num_classes)),  # classifier[3]
    )

    bert_vec = init(ks[12], (batch, bert_dim), scale=1.0)
    lex_vec = init(ks[13], (batch, lex_dim), scale=1.0)
    syn_vec = init(ks[14], (batch, syn_dim), scale=1.0)

    out = feature_attention_fusion(bert_vec, lex_vec, syn_vec, params)
    out = jax.block_until_ready(out)

    ref = _reference(bert_vec, lex_vec, syn_vec, params)
    assert out.shape == (batch, num_classes)
    # all-f32 path (default TPU matmul precision on both sides); comfortable margin
    assert jnp.allclose(out, ref, atol=5e-3, rtol=5e-3), "mismatch vs reference"

    print("KERNEL_OK")
</pallas_src>

<mosaic_0001>
module attributes {stable_mosaic.version = 11 : i64} {
  func.func @kernel(%arg0: i32, %arg1: memref<128x32xf32, #tpu.memory_space<vmem>>, %arg2: memref<128x16xf32, #tpu.memory_space<vmem>>, %arg3: memref<128x8xf32, #tpu.memory_space<vmem>>, %arg4: memref<32x128xf32, #tpu.memory_space<vmem>>, %arg5: memref<16x128xf32, #tpu.memory_space<vmem>>, %arg6: memref<8x128xf32, #tpu.memory_space<vmem>>, %arg7: memref<3x128xf32, #tpu.memory_space<vmem>>, %arg8: memref<128x128xf32, #tpu.memory_space<vmem>>, %arg9: memref<128x4xf32, #tpu.memory_space<vmem>>, %arg10: memref<8x128xf32, #tpu.memory_space<vmem>>, %arg11: memref<128x4xf32, #tpu.memory_space<vmem>>) attributes {dimension_semantics = [#tpu.dimension_semantics<parallel>], iteration_bounds = array<i64: 1>, scalar_prefetch = 0 : i64, scratch_operands = 0 : i64, tpu.core_type = #tpu.core_type<tc>, window_params = [{transform_indices = @transform_0, window_bounds = array<i64: 128, 32>}, {transform_indices = @transform_1, window_bounds = array<i64: 128, 16>}, {transform_indices = @transform_2, window_bounds = array<i64: 128, 8>}, {pipeline_mode = #tpu.pipeline_mode<synchronous>, transform_indices = @transform_3, window_bounds = array<i64: 32, 128>}, {pipeline_mode = #tpu.pipeline_mode<synchronous>, transform_indices = @transform_4, window_bounds = array<i64: 16, 128>}, {pipeline_mode = #tpu.pipeline_mode<synchronous>, transform_indices = @transform_5, window_bounds = array<i64: 8, 128>}, {pipeline_mode = #tpu.pipeline_mode<synchronous>, transform_indices = @transform_6, window_bounds = array<i64: 3, 128>}, {pipeline_mode = #tpu.pipeline_mode<synchronous>, transform_indices = @transform_7, window_bounds = array<i64: 128, 128>}, {pipeline_mode = #tpu.pipeline_mode<synchronous>, transform_indices = @transform_8, window_bounds = array<i64: 128, 4>}, {pipeline_mode = #tpu.pipeline_mode<synchronous>, transform_indices = @transform_9, window_bounds = array<i64: 8, 128>}, {transform_indices = @transform_10, window_bounds = array<i64: 128, 4>}]} {
    %c0 = arith.constant 0 : index
    %c0_0 = arith.constant 0 : index
    %0 = vector.load %arg1[%c0, %c0_0] : memref<128x32xf32, #tpu.memory_space<vmem>>, vector<128x32xf32>
    %c0_1 = arith.constant 0 : index
    %c0_2 = arith.constant 0 : index
    %1 = vector.load %arg4[%c0_1, %c0_2] : memref<32x128xf32, #tpu.memory_space<vmem>>, vector<32x128xf32>
    %cst = arith.constant dense<0.000000e+00> : vector<128x128xf32>
    %2 = tpu.matmul %0, %1, %cst {dimension_numbers = #tpu.dot_dimension_numbers<[1], [0], [0], [1], [0, 0, 1, 1], [], []>} : vector<128x32xf32>, vector<32x128xf32>, vector<128x128xf32> -> vector<128x128xf32>
    %c0_3 = arith.constant 0 : index
    %c0_4 = arith.constant 0 : index
    %3 = vector.load %arg2[%c0_3, %c0_4] : memref<128x16xf32, #tpu.memory_space<vmem>>, vector<128x16xf32>
    %c0_5 = arith.constant 0 : index
    %c0_6 = arith.constant 0 : index
    %4 = vector.load %arg5[%c0_5, %c0_6] : memref<16x128xf32, #tpu.memory_space<vmem>>, vector<16x128xf32>
    %cst_7 = arith.constant dense<0.000000e+00> : vector<128x128xf32>
    %5 = tpu.matmul %3, %4, %cst_7 {dimension_numbers = #tpu.dot_dimension_numbers<[1], [0], [0], [1], [0, 0, 1, 1], [], []>} : vector<128x16xf32>, vector<16x128xf32>, vector<128x128xf32> -> vector<128x128xf32>
    %6 = arith.addf %2, %5 : vector<128x128xf32>
    %c0_8 = arith.constant 0 : index
    %c0_9 = arith.constant 0 : index
    %7 = vector.load %arg3[%c0_8, %c0_9] : memref<128x8xf32, #tpu.memory_space<vmem>>, vector<128x8xf32>
    %c0_10 = arith.constant 0 : index
    %c0_11 = arith.constant 0 : index
    %8 = vector.load %arg6[%c0_10, %c0_11] : memref<8x128xf32, #tpu.memory_space<vmem>>, vector<8x128xf32>
    %cst_12 = arith.constant dense<0.000000e+00> : vector<128x128xf32>
    %9 = tpu.matmul %7, %8, %cst_12 {dimension_numbers = #tpu.dot_dimension_numbers<[1], [0], [0], [1], [0, 0, 1, 1], [], []>} : vector<128x8xf32>, vector<8x128xf32>, vector<128x128xf32> -> vector<128x128xf32>
    %10 = arith.addf %6, %9 : vector<128x128xf32>
    %c0_13 = arith.constant 0 : index
    %c0_14 = arith.constant 0 : index
    %11 = vector.load %arg10[%c0_13, %c0_14] : memref<8x128xf32, #tpu.memory_space<vmem>>, vector<1x128xf32>
    %12 = vector.broadcast %11 : vector<1x128xf32> to vector<128x128xf32>
    %13 = arith.addf %10, %12 : vector<128x128xf32>
    %14 = vector.extract_strided_slice %13 {offsets = [0, 0], sizes = [128, 3], strides = [1, 1]} : vector<128x128xf32> to vector<128x3xf32>
    %15 = vector.extract_strided_slice %13 {offsets = [0, 0], sizes = [128, 1], strides = [1, 1]} : vector<128x128xf32> to vector<128x1xf32>
    %16 = vector.extract_strided_slice %13 {offsets = [0, 1], sizes = [128, 1], strides = [1, 1]} : vector<128x128xf32> to vector<128x1xf32>
    %17 = arith.maximumf %15, %16 : vector<128x1xf32>
    %18 = vector.extract_strided_slice %13 {offsets = [0, 2], sizes = [128, 1], strides = [1, 1]} : vector<128x128xf32> to vector<128x1xf32>
    %19 = arith.maximumf %17, %18 : vector<128x1xf32>
    %20 = vector.broadcast %19 : vector<128x1xf32> to vector<128x3xf32>
    %21 = arith.subf %14, %20 : vector<128x3xf32>
    %22 = math.exp %21 : vector<128x3xf32>
    %23 = vector.extract_strided_slice %22 {offsets = [0, 0], sizes = [128, 1], strides = [1, 1]} : vector<128x3xf32> to vector<128x1xf32>
    %24 = vector.extract_strided_slice %22 {offsets = [0, 1], sizes = [128, 1], strides = [1, 1]} : vector<128x3xf32> to vector<128x1xf32>
    %25 = arith.addf %23, %24 : vector<128x1xf32>
    %26 = vector.extract_strided_slice %22 {offsets = [0, 2], sizes = [128, 1], strides = [1, 1]} : vector<128x3xf32> to vector<128x1xf32>
    %27 = arith.addf %25, %26 : vector<128x1xf32>
    %28 = vector.broadcast %27 : vector<128x1xf32> to vector<128x3xf32>
    %29 = arith.divf %22, %28 : vector<128x3xf32>
    %c0_15 = arith.constant 0 : index
    %c0_16 = arith.constant 0 : index
    %30 = vector.load %arg7[%c0_15, %c0_16] : memref<3x128xf32, #tpu.memory_space<vmem>>, vector<3x128xf32>
    %cst_17 = arith.constant dense<0.000000e+00> : vector<128x128xf32>
    %31 = tpu.matmul %29, %30, %cst_17 {dimension_numbers = #tpu.dot_dimension_numbers<[1], [0], [0], [1], [0, 0, 1, 1], [], []>} : vector<128x3xf32>, vector<3x128xf32>, vector<128x128xf32> -> vector<128x128xf32>
    %32 = arith.mulf %31, %13 : vector<128x128xf32>
    %c0_18 = arith.constant 0 : index
    %c0_19 = arith.constant 0 : index
    %33 = vector.load %arg8[%c0_18, %c0_19] : memref<128x128xf32, #tpu.memory_space<vmem>>, vector<128x128xf32>
    %cst_20 = arith.constant dense<0.000000e+00> : vector<128x128xf32>
    %34 = tpu.matmul %32, %33, %cst_20 {dimension_numbers = #tpu.dot_dimension_numbers<[1], [0], [0], [1], [0, 0, 1, 1], [], []>} : vector<128x128xf32>, vector<128x128xf32>, vector<128x128xf32> -> vector<128x128xf32>
    %c1 = arith.constant 1 : index
    %c0_21 = arith.constant 0 : index
    %35 = vector.load %arg10[%c1, %c0_21] : memref<8x128xf32, #tpu.memory_space<vmem>>, vector<1x128xf32>
    %36 = vector.broadcast %35 : vector<1x128xf32> to vector<128x128xf32>
    %37 = arith.addf %34, %36 : vector<128x128xf32>
    %cst_22 = arith.constant 0.000000e+00 : f32
    %38 = vector.broadcast %cst_22 : f32 to vector<128x128xf32>
    %39 = arith.maximumf %37, %38 : vector<128x128xf32>
    %c0_23 = arith.constant 0 : index
    %c0_24 = arith.constant 0 : index
    %40 = vector.load %arg9[%c0_23, %c0_24] : memref<128x4xf32, #tpu.memory_space<vmem>>, vector<128x4xf32>
    %cst_25 = arith.constant dense<0.000000e+00> : vector<128x4xf32>
    %41 = tpu.matmul %39, %40, %cst_25 {dimension_numbers = #tpu.dot_dimension_numbers<[1], [0], [0], [1], [0, 0, 1, 1], [], []>} : vector<128x128xf32>, vector<128x4xf32>, vector<128x4xf32> -> vector<128x4xf32>
    %c2 = arith.constant 2 : index
    %c0_26 = arith.constant 0 : index
    %42 = vector.load %arg10[%c2, %c0_26] : memref<8x128xf32, #tpu.memory_space<vmem>>, vector<1x4xf32>
    %43 = vector.broadcast %42 : vector<1x4xf32> to vector<128x4xf32>
    %44 = arith.addf %41, %43 : vector<128x4xf32>
    %c0_27 = arith.constant 0 : index
    %c0_28 = arith.constant 0 : index
    %45 = vector.load %arg11[%c0_27, %c0_28] : memref<128x4xf32, #tpu.memory_space<vmem>>, vector<128x4xf32>
    tpu.vector_store %arg11[%c0_27, %c0_28], %44 {strides = array<i32>} : memref<128x4xf32, #tpu.memory_space<vmem>>, vector<128x4xf32>,
    return
  }
  func.func @transform_0(%arg0: i32) -> (i32, i32) {
    %c0_i32 = arith.constant 0 : i32
    %c0_i32_0 = arith.constant 0 : i32
    return %arg0, %c0_i32 : i32, i32
  }
  func.func @transform_1(%arg0: i32) -> (i32, i32) {
    %c0_i32 = arith.constant 0 : i32
    %c0_i32_0 = arith.constant 0 : i32
    return %arg0, %c0_i32 : i32, i32
  }
  func.func @transform_2(%arg0: i32) -> (i32, i32) {
    %c0_i32 = arith.constant 0 : i32
    %c0_i32_0 = arith.constant 0 : i32
    return %arg0, %c0_i32 : i32, i32
  }
  func.func @transform_3(%arg0: i32) -> (i32, i32) {
    %c0_i32 = arith.constant 0 : i32
    %c0_i32_0 = arith.constant 0 : i32
    %c0_i32_1 = arith.constant 0 : i32
    return %c0_i32, %c0_i32_0 : i32, i32
  }
  func.func @transform_4(%arg0: i32) -> (i32, i32) {
    %c0_i32 = arith.constant 0 : i32
    %c0_i32_0 = arith.constant 0 : i32
    %c0_i32_1 = arith.constant 0 : i32
    return %c0_i32, %c0_i32_0 : i32, i32
  }
  func.func @transform_5(%arg0: i32) -> (i32, i32) {
    %c0_i32 = arith.constant 0 : i32
    %c0_i32_0 = arith.constant 0 : i32
    %c0_i32_1 = arith.constant 0 : i32
    return %c0_i32, %c0_i32_0 : i32, i32
  }
  func.func @transform_6(%arg0: i32) -> (i32, i32) {
    %c0_i32 = arith.constant 0 : i32
    %c0_i32_0 = arith.constant 0 : i32
    %c0_i32_1 = arith.constant 0 : i32
    return %c0_i32, %c0_i32_0 : i32, i32
  }
  func.func @transform_7(%arg0: i32) -> (i32, i32) {
    %c0_i32 = arith.constant 0 : i32
    %c0_i32_0 = arith.constant 0 : i32
    %c0_i32_1 = arith.constant 0 : i32
    return %c0_i32, %c0_i32_0 : i32, i32
  }
  func.func @transform_8(%arg0: i32) -> (i32, i32) {
    %c0_i32 = arith.constant 0 : i32
    %c0_i32_0 = arith.constant 0 : i32
    %c0_i32_1 = arith.constant 0 : i32
    return %c0_i32, %c0_i32_0 : i32, i32
  }
  func.func @transform_9(%arg0: i32) -> (i32, i32) {
    %c0_i32 = arith.constant 0 : i32
    %c0_i32_0 = arith.constant 0 : i32
    %c0_i32_1 = arith.constant 0 : i32
    return %c0_i32, %c0_i32_0 : i32, i32
  }
  func.func @transform_10(%arg0: i32) -> (i32, i32) {
    %c0_i32 = arith.constant 0 : i32
    %c0_i32_0 = arith.constant 0 : i32
    return %arg0, %c0_i32 : i32, i32
  }
}

</mosaic_0001>

<bundles_post_ra>
// kernel: tpu_custom_call.1
= control target key start
LH: loop header
LB: loop body
LE: loop exit
PB: predicated region body
PF: predicated region fallthrough
CT: control target
= control target key end

     0   :  { %vm73_vm0 = vcmask 130048   ;;  %vm267_vm1 = vcmask 261120   ;;  %vm478_vm2 = vcmask 64512   ;;  %v2426_v58 = vmov 0   ;;  %s2427_s27 = smov 126   ;;  %s2428_s28 = smov 127   ;;  %s3157_s4 = inlined_call_operand.vmem [shape: f32[16,128], index: 4, kind: input, shape index: {}]   ;;  %s3158_s1 = inlined_call_operand.vmem [shape: f32[128,16], index: 1, kind: input, shape index: {}]   ;;  %s3159_s3 = inlined_call_operand.vmem [shape: f32[32,128], index: 3, kind: input, shape index: {}]   ;;  %s3160_s5 = inlined_call_operand.vmem [shape: f32[8,128], index: 5, kind: input, shape index: {}]   ;;  %s3161_s0 = inlined_call_operand.vmem [shape: f32[128,32], index: 0, kind: input, shape index: {}]   ;;  %s3162_s2 = inlined_call_operand.vmem [shape: f32[128,8], index: 2, kind: input, shape index: {}]   ;;  %s3163_s9 = inlined_call_operand.vmem [shape: f32[8,128], index: 9, kind: input, shape index: {}]   ;;  %s3164_s6 = inlined_call_operand.vmem [shape: f32[3,128], index: 6, kind: input, shape index: {}]   ;;  %s3165_s7 = inlined_call_operand.vmem [shape: f32[128,128], index: 7, kind: input, shape index: {}]   ;;  %s3166_s8 = inlined_call_operand.vmem [shape: f32[128,4], index: 8, kind: input, shape index: {}]   ;;  %s3167_s10 = inlined_call_operand.vmem [shape: f32[128,4], index: 10, kind: output, shape index: {}]  }
   0x1   :  { %v71_v0 = vld [vmem:[%s3157_s4] sm:$0xff]  ;;  %v72_v1 = vld [vmem:[%s3157_s4 + $0x8] sm:$0xff]  ;;  %v53_v8 = vld [vmem:[%s3159_s3 + $0x10] sm:$0xff]  ;;  %2361 = vset.pattern.permute.xlu1 %v2426_v58  ;;  %2360 = vset.pattern.permute.xlu0 %v2426_v58  ;;  %vm1287_vm3 = vcmask 1042432   ;;  %vm1238_vm4 = vcmask 23552   ;;  %vm1800_vm5 = vcmask 31744  }
   0x2   :  { %v55_v2 = vld [vmem:[%s3158_s1] sm:$0xff]  ;;  %v2249_v3 = vpack.c.bf16 %v72_v1, %v71_v0  ;;  %v52_v5 = vld [vmem:[%s3159_s3 + $0x8] sm:$0xff]  ;;  %v57_v9 = vld [vmem:[%s3158_s1 + $0x10] sm:$0xff] }
   0x3   :  { %2029 = vmatprep.mubr.msk.f32.mxu0 %vm73_vm0, %v55_v2  ;;  %v51_v4 = vld [vmem:[%s3159_s3] sm:$0xff]  ;;  %v56_v7 = vld [vmem:[%s3158_s1 + $0x8] sm:$0xff]  ;;  %v54_v10 = vld [vmem:[%s3159_s3 + $0x18] sm:$0xff] }
   0x4   :  { %v2253_v6 = vpack.c.bf16 %v52_v5, %v51_v4  ;;  %2250 = vmatprep.subr.bf16.mxu0 %v2249_v3  ;;  %v2257_v11 = vpack.c.bf16 %v54_v10, %v53_v8  ;;  %v58_v12 = vld [vmem:[%s3158_s1 + $0x18] sm:$0xff]  ;;  %v59_v13 = vld [vmem:[%s3158_s1 + $0x20] sm:$0xff]  ;;  %v60_v15 = vld [vmem:[%s3158_s1 + $0x28] sm:$0xff] }
   0x5   :  { %2252 = vmatpush3.bf16.msra.mxu0 %v2249_v3  ;;  %v477_v14 = vld [vmem:[%s3160_s5] sm:$0xff]  ;;  %v61_v16 = vld [vmem:[%s3158_s1 + $0x30] sm:$0xff]  ;;  %v62_v17 = vld [vmem:[%s3158_s1 + $0x38] sm:$0xff] }
   0x6   :  { %2254 = vmatprep.subr.bf16.mxu0 %v2253_v6  ;;  %v63_v18 = vld [vmem:[%s3158_s1 + $0x40] sm:$0xff]  ;;  %v64_v19 = vld [vmem:[%s3158_s1 + $0x48] sm:$0xff]  ;;  %v65_v20 = vld [vmem:[%s3158_s1 + $0x50] sm:$0xff] }
   0x7   :  { %v66_v21 = vld [vmem:[%s3158_s1 + $0x58] sm:$0xff]  ;;  %v67_v22 = vld [vmem:[%s3158_s1 + $0x60] sm:$0xff]  ;;  %v68_v23 = vld [vmem:[%s3158_s1 + $0x68] sm:$0xff] }
   0x8   :  { %2030 = vmatmul.mubr.msk.f32.vlgmr.msra.gmra.mrb[0].mxu0 %vm73_vm0, %v56_v7  ;;  %v69_v24 = vld [vmem:[%s3158_s1 + $0x70] sm:$0xff]  ;;  %v70_v25 = vld [vmem:[%s3158_s1 + $0x78] sm:$0xff]  ;;  %v35_v26 = vld [vmem:[%s3161_s0] sm:$0xff] }
   0x9   :  { %2256 = vmatpush3.bf16.msra.mxu0 %v2253_v6  ;;  %2032 = vmatprep.mubr.msk.f32.mxu0 %vm73_vm0, %v57_v9  ;;  %v36_v27 = vld [vmem:[%s3161_s0 + $0x8] sm:$0xff]  ;;  %v37_v28 = vld [vmem:[%s3161_s0 + $0x10] sm:$0xff]  ;;  %v38_v29 = vld [vmem:[%s3161_s0 + $0x18] sm:$0xff] }
   0xa   :  { %2258 = vmatprep.subr.bf16.mxu0 %v2257_v11  ;;  %v39_v30 = vld [vmem:[%s3161_s0 + $0x20] sm:$0xff]  ;;  %v40_v31 = vld [vmem:[%s3161_s0 + $0x28] sm:$0xff]  ;;  %v41_v32 = vld [vmem:[%s3161_s0 + $0x30] sm:$0xff] }
   0xb   :  { %v42_v33 = vld [vmem:[%s3161_s0 + $0x38] sm:$0xff]  ;;  %v43_v34 = vld [vmem:[%s3161_s0 + $0x40] sm:$0xff]  ;;  %v44_v35 = vld [vmem:[%s3161_s0 + $0x48] sm:$0xff] }
   0xc   :  { %2033 = vmatmul.mubr.msk.f32.gmra.mrb[2].mxu0 %vm73_vm0, %v58_v12  ;;  %v45_v36 = vld [vmem:[%s3161_s0 + $0x50] sm:$0xff]  ;;  %v46_v37 = vld [vmem:[%s3161_s0 + $0x58] sm:$0xff]  ;;  %v47_v38 = vld [vmem:[%s3161_s0 + $0x60] sm:$0xff] }
   0xd   :  { %2035 = vmatprep.mubr.msk.f32.mxu0 %vm73_vm0, %v59_v13  ;;  %2260 = vmatpush3.bf16.msra.mxu0 %v2257_v11  ;;  %v48_v39 = vld [vmem:[%s3161_s0 + $0x68] sm:$0xff]  ;;  %v49_v40 = vld [vmem:[%s3161_s0 + $0x70] sm:$0xff]  ;;  %v50_v41 = vld [vmem:[%s3161_s0 + $0x78] sm:$0xff] }
   0xe   :  { %2085 = vmatprep.subr.mxu0 %v477_v14  ;;  %v461_v42 = vld [vmem:[%s3162_s2] sm:$0xff]  ;;  %v462_v43 = vld [vmem:[%s3162_s2 + $0x8] sm:$0xff]  ;;  %v463_v44 = vld [vmem:[%s3162_s2 + $0x10] sm:$0xff] }
   0xf   :  { %v464_v45 = vld [vmem:[%s3162_s2 + $0x18] sm:$0xff]  ;;  %v465_v46 = vld [vmem:[%s3162_s2 + $0x20] sm:$0xff]  ;;  %v466_v47 = vld [vmem:[%s3162_s2 + $0x28] sm:$0xff] }
  0x10   :  { %2036 = vmatmul.mubr.msk.f32.gmra.mrb[4].mxu0 %vm73_vm0, %v60_v15  ;;  %v467_v48 = vld [vmem:[%s3162_s2 + $0x30] sm:$0xff]  ;;  %v468_v49 = vld [vmem:[%s3162_s2 + $0x38] sm:$0xff]  ;;  %v469_v50 = vld [vmem:[%s3162_s2 + $0x40] sm:$0xff] }
  0x11   :  { %2038 = vmatprep.mubr.msk.f32.mxu0 %vm73_vm0, %v61_v16  ;;  %v470_v51 = vld [vmem:[%s3162_s2 + $0x48] sm:$0xff]  ;;  %v471_v52 = vld [vmem:[%s3162_s2 + $0x50] sm:$0xff]  ;;  %v472_v53 = vld [vmem:[%s3162_s2 + $0x58] sm:$0xff] }
  0x12   :  { %v473_v54 = vld [vmem:[%s3162_s2 + $0x60] sm:$0xff]  ;;  %v474_v55 = vld [vmem:[%s3162_s2 + $0x68] sm:$0xff]  ;;  %v475_v56 = vld [vmem:[%s3162_s2 + $0x70] sm:$0xff] }
  0x13   :  { %v476_v57 = vld [vmem:[%s3162_s2 + $0x78] sm:$0xff]  ;;  %v1869_v59 = vld [vmem:[%s3163_s9] ss:$0 sm:$0xff] }
  0x14   :  { %2039 = vmatmul.mubr.msk.f32.gmra.mrb[6].mxu0 %vm73_vm0, %v62_v17 }
  0x15   :  { %2041 = vmatprep.mubr.msk.f32.mxu0 %vm73_vm0, %v63_v18 }
  0x18   :  { %2042 = vmatmul.mubr.msk.f32.gmra.mrb[8].mxu0 %vm73_vm0, %v64_v19 }
  0x19   :  { %2044 = vmatprep.mubr.msk.f32.mxu0 %vm73_vm0, %v65_v20 }
  0x1c   :  { %2045 = vmatmul.mubr.msk.f32.gmra.mrb[10].mxu0 %vm73_vm0, %v66_v21 }
  0x1d   :  { %2047 = vmatprep.mubr.msk.f32.mxu0 %vm73_vm0, %v67_v22 }
  0x20   :  { %2048 = vmatmul.mubr.msk.f32.gmra.mrb[12].mxu0 %vm73_vm0, %v68_v23 }
  0x21   :  { %2050 = vmatprep.mubr.msk.f32.mxu0 %vm73_vm0, %v69_v24 }
  0x24   :  { %2051 = vmatmul.mubr.msk.f32.gmra.mrb[14].mxu0 %vm73_vm0, %v70_v25 }
  0x25   :  { %2061 = vmatprep.mubr.msk.f32.mxu0 %vm267_vm1, %v35_v26 }
  0x28   :  { %2062 = vmatmul.mubr.msk.f32.vlgmr.msra.gmra.mrb[0].mxu0 %vm267_vm1, %v36_v27 }
  0x29   :  { %2086 = vmatpush3.msra.mxu0 %v477_v14  ;;  %2064 = vmatprep.mubr.msk.f32.mxu0 %vm267_vm1, %v37_v28 }
  0x2c   :  { %2065 = vmatmul.mubr.msk.f32.gmra.mrb[2].mxu0 %vm267_vm1, %v38_v29 }
  0x2d   :  { %2067 = vmatprep.mubr.msk.f32.mxu0 %vm267_vm1, %v39_v30 }
  0x30   :  { %2068 = vmatmul.mubr.msk.f32.gmra.mrb[4].mxu0 %vm267_vm1, %v40_v31 }
  0x31   :  { %2070 = vmatprep.mubr.msk.f32.mxu0 %vm267_vm1, %v41_v32 }
  0x34   :  { %2071 = vmatmul.mubr.msk.f32.gmra.mrb[6].mxu0 %vm267_vm1, %v42_v33 }
  0x35   :  { %2073 = vmatprep.mubr.msk.f32.mxu0 %vm267_vm1, %v43_v34 }
  0x38   :  { %2074 = vmatmul.mubr.msk.f32.gmra.mrb[8].mxu0 %vm267_vm1, %v44_v35 }
  0x39   :  { %2076 = vmatprep.mubr.msk.f32.mxu0 %vm267_vm1, %v45_v36 }
  0x3c   :  { %2077 = vmatmul.mubr.msk.f32.gmra.mrb[10].mxu0 %vm267_vm1, %v46_v37 }
  0x3d   :  { %2079 = vmatprep.mubr.msk.f32.mxu0 %vm267_vm1, %v47_v38 }
  0x40   :  { %2080 = vmatmul.mubr.msk.f32.gmra.mrb[12].mxu0 %vm267_vm1, %v48_v39 }
  0x41   :  { %2082 = vmatprep.mubr.msk.f32.mxu0 %vm267_vm1, %v49_v40 }
  0x44   :  { %2083 = vmatmul.mubr.msk.f32.gmra.mrb[14].mxu0 %vm267_vm1, %v50_v41 }
  0x45   :  { %2087 = vmatprep.mubr.msk.f32.mxu0 %vm478_vm2, %v461_v42 }
  0x48   :  { %2088 = vmatmul.mubr.msk.f32.vlgmr.msra.gmra.mrb[0].mxu0 %vm478_vm2, %v462_v43 }
  0x49   :  { %2090 = vmatprep.mubr.msk.f32.mxu0 %vm478_vm2, %v463_v44 }
  0x4c   :  { %2091 = vmatmul.mubr.msk.f32.gmra.mrb[2].mxu0 %vm478_vm2, %v464_v45 }
  0x4d   :  { %2093 = vmatprep.mubr.msk.f32.mxu0 %vm478_vm2, %v465_v46 }
  0x50   :  { %2094 = vmatmul.mubr.msk.f32.gmra.mrb[4].mxu0 %vm478_vm2, %v466_v47 }
  0x51   :  { %2096 = vmatprep.mubr.msk.f32.mxu0 %vm478_vm2, %v467_v48 }
  0x54   :  { %2097 = vmatmul.mubr.msk.f32.gmra.mrb[6].mxu0 %vm478_vm2, %v468_v49 }
  0x55   :  { %2099 = vmatprep.mubr.msk.f32.mxu0 %vm478_vm2, %v469_v50 }
  0x58   :  { %2100 = vmatmul.mubr.msk.f32.gmra.mrb[8].mxu0 %vm478_vm2, %v470_v51 }
  0x59   :  { %2102 = vmatprep.mubr.msk.f32.mxu0 %vm478_vm2, %v471_v52 }
  0x5c   :  { %2103 = vmatmul.mubr.msk.f32.gmra.mrb[10].mxu0 %vm478_vm2, %v472_v53 }
  0x5d   :  { %2105 = vmatprep.mubr.msk.f32.mxu0 %vm478_vm2, %v473_v54 }
  0x60   :  { %2106 = vmatmul.mubr.msk.f32.gmra.mrb[12].mxu0 %vm478_vm2, %v474_v55 }
  0x61   :  { %2108 = vmatprep.mubr.msk.f32.mxu0 %vm478_vm2, %v475_v56 }
  0x64   :  { %2109 = vmatmul.mubr.msk.f32.gmra.mrb[14].mxu0 %vm478_vm2, %v476_v57 }
 0x11b   :  { %v2089_v60 = vpop.f32.mrb[0].mxu0 }
 0x11c   :  { %v2700_v61 = vadd.f32 %v2089_v60, %v1869_v59  ;;  %v593_v62 = vpop.f32.mrb[1].mxu0 }
 0x11d   :  { %v2706_v0 = vadd.f32 %v1869_v59, %v593_v62 }
 0x11e   :  { %791 = vrot.lane.b32.xlu1 %v2700_v61, %s2427_s27  ;;  %727 = vrot.lane.b32.xlu0 %v2700_v61, %s2428_s28 }
 0x11f   :  { %v2092_v63 = vpop.f32.mrb[2].mxu0 }
 0x120   :  { %v603_v1 = vpop.f32.mrb[3].mxu0  ;;  %v2712_v3 = vadd.f32 %v2092_v63, %v1869_v59 }
 0x121   :  { %v2714_v4 = vadd.f32 %v1869_v59, %v603_v1 }
 0x122   :  { %789 = vrot.lane.b32.xlu1 %v2706_v0, %s2427_s27  ;;  %725 = vrot.lane.b32.xlu0 %v2706_v0, %s2428_s28 }
 0x123   :  { %v2095_v2 = vpop.f32.mrb[4].mxu0 }
 0x124   :  { %v613_v5 = vpop.f32.mrb[5].mxu0  ;;  %v2724_v9 = vadd.f32 %v2095_v2, %v1869_v59 }
 0x125   :  { %v2726_v10 = vadd.f32 %v1869_v59, %v613_v5 }
 0x126   :  { %731 = vrot.lane.b32.xlu1 %v2712_v3, %s2428_s28  ;;  %729 = vrot.lane.b32.xlu0 %v2714_v4, %s2428_s28 }
 0x127   :  { %v2098_v6 = vpop.f32.mrb[6].mxu0 }
 0x128   :  { %v623_v7 = vpop.f32.mrb[7].mxu0  ;;  %v2736_v15 = vadd.f32 %v2098_v6, %v1869_v59 }
 0x129   :  { %v2738_v16 = vadd.f32 %v1869_v59, %v623_v7 }
 0x12a   :  { %795 = vrot.lane.b32.xlu1 %v2712_v3, %s2427_s27  ;;  %793 = vrot.lane.b32.xlu0 %v2714_v4, %s2427_s27 }
 0x12b   :  { %v2101_v8 = vpop.f32.mrb[8].mxu0 }
 0x12c   :  { %v633_v11 = vpop.f32.mrb[9].mxu0  ;;  %v2748_v20 = vadd.f32 %v2101_v8, %v1869_v59 }
 0x12d   :  { %v2750_v21 = vadd.f32 %v1869_v59, %v633_v11 }
 0x12e   :  { %735 = vrot.lane.b32.xlu1 %v2724_v9, %s2428_s28  ;;  %733 = vrot.lane.b32.xlu0 %v2726_v10, %s2428_s28 }
 0x12f   :  { %v2104_v12 = vpop.f32.mrb[10].mxu0 }
 0x130   :  { %v643_v13 = vpop.f32.mrb[11].mxu0  ;;  %v2760_v22 = vadd.f32 %v2104_v12, %v1869_v59 }
 0x131   :  { %v2762_v23 = vadd.f32 %v1869_v59, %v643_v13 }
 0x132   :  { %799 = vrot.lane.b32.xlu1 %v2724_v9, %s2427_s27  ;;  %797 = vrot.lane.b32.xlu0 %v2726_v10, %s2427_s27 }
 0x133   :  { %v2107_v14 = vpop.f32.mrb[12].mxu0 }
 0x134   :  { %v653_v17 = vpop.f32.mrb[13].mxu0  ;;  %v2772_v24 = vadd.f32 %v2107_v14, %v1869_v59 }
 0x135   :  { %v2774_v25 = vadd.f32 %v1869_v59, %v653_v17 }
 0x136   :  { %739 = vrot.lane.b32.xlu1 %v2736_v15, %s2428_s28  ;;  %737 = vrot.lane.b32.xlu0 %v2738_v16, %s2428_s28 }
 0x137   :  { %v2110_v18 = vpop.f32.mrb[14].mxu0 }
 0x138   :  { %v663_v19 = vpop.f32.mrb[15].mxu0  ;;  %v2784_v26 = vadd.f32 %v2110_v18, %v1869_v59 }
 0x139   :  { %v2786_v27 = vadd.f32 %v1869_v59, %v663_v19 }
 0x13a   :  { %803 = vrot.lane.b32.xlu1 %v2736_v15, %s2427_s27  ;;  %801 = vrot.lane.b32.xlu0 %v2738_v16, %s2427_s27 }
 0x13e   :  { %743 = vrot.lane.b32.xlu1 %v2748_v20, %s2428_s28  ;;  %741 = vrot.lane.b32.xlu0 %v2750_v21, %s2428_s28 }
 0x142   :  { %807 = vrot.lane.b32.xlu1 %v2748_v20, %s2427_s27  ;;  %805 = vrot.lane.b32.xlu0 %v2750_v21, %s2427_s27 }
 0x146   :  { %747 = vrot.lane.b32.xlu1 %v2760_v22, %s2428_s28  ;;  %745 = vrot.lane.b32.xlu0 %v2762_v23, %s2428_s28 }
 0x14a   :  { %811 = vrot.lane.b32.xlu1 %v2760_v22, %s2427_s27  ;;  %809 = vrot.lane.b32.xlu0 %v2762_v23, %s2427_s27 }
 0x14e   :  { %751 = vrot.lane.b32.xlu1 %v2772_v24, %s2428_s28  ;;  %749 = vrot.lane.b32.xlu0 %v2774_v25, %s2428_s28 }
 0x152   :  { %815 = vrot.lane.b32.xlu1 %v2772_v24, %s2427_s27  ;;  %813 = vrot.lane.b32.xlu0 %v2774_v25, %s2427_s27 }
 0x156   :  { %755 = vrot.lane.b32.xlu1 %v2784_v26, %s2428_s28  ;;  %753 = vrot.lane.b32.xlu0 %v2786_v27, %s2428_s28 }
 0x15a   :  { %819 = vrot.lane.b32.xlu1 %v2784_v26, %s2427_s27  ;;  %817 = vrot.lane.b32.xlu0 %v2786_v27, %s2427_s27 }
 0x190   :  { %v792_v28 = vpop.permute.xlu1 %791  ;;  %v728_v29 = vpop.permute.xlu0 %727 }
 0x191   :  { %v774_v30 = vmax.f32 %v2700_v61, %v728_v29 }
 0x193   :  { %v838_v31 = vmax.f32 %v774_v30, %v792_v28 }
 0x194   :  { %v790_v32 = vpop.permute.xlu1 %789  ;;  %v726_v33 = vpop.permute.xlu0 %725 }
 0x195   :  { %v773_v34 = vmax.f32 %v2706_v0, %v726_v33  ;;  %860 = vperm.xlu1 %2361, %v838_v31  }
 0x197   :  { %v837_v35 = vmax.f32 %v773_v34, %v790_v32 }
 0x198   :  { %v732_v36 = vpop.permute.xlu1 %731  ;;  %v730_v37 = vpop.permute.xlu0 %729 }
 0x199   :  { %855 = vperm.xlu0 %2360, %v837_v35   ;;  %v776_v38 = vmax.f32 %v2712_v3, %v732_v36  ;;  %v775_v39 = vmax.f32 %v2714_v4, %v730_v37 }
 0x19c   :  { %v796_v40 = vpop.permute.xlu1 %795  ;;  %v794_v41 = vpop.permute.xlu0 %793 }
 0x19d   :  { %v840_v42 = vmax.f32 %v776_v38, %v796_v40  ;;  %v839_v43 = vmax.f32 %v775_v39, %v794_v41 }
 0x19f   :  { %865 = vperm.xlu1 %2361, %v839_v43   ;;  %870 = vperm.xlu0 %2360, %v840_v42  }
 0x1a0   :  { %v736_v44 = vpop.permute.xlu1 %735  ;;  %v734_v45 = vpop.permute.xlu0 %733 }
 0x1a1   :  { %v778_v46 = vmax.f32 %v2724_v9, %v736_v44  ;;  %v777_v47 = vmax.f32 %v2726_v10, %v734_v45 }
 0x1a4   :  { %v800_v48 = vpop.permute.xlu1 %799  ;;  %v798_v49 = vpop.permute.xlu0 %797 }
 0x1a5   :  { %v842_v50 = vmax.f32 %v778_v46, %v800_v48  ;;  %v841_v51 = vmax.f32 %v777_v47, %v798_v49 }
 0x1a7   :  { %875 = vperm.xlu1 %2361, %v841_v51   ;;  %880 = vperm.xlu0 %2360, %v842_v50  }
 0x1a8   :  { %v740_v52 = vpop.permute.xlu1 %739  ;;  %v738_v53 = vpop.permute.xlu0 %737 }
 0x1a9   :  { %v780_v54 = vmax.f32 %v2736_v15, %v740_v52  ;;  %v779_v55 = vmax.f32 %v2738_v16, %v738_v53 }
 0x1ac   :  { %v804_v56 = vpop.permute.xlu1 %803  ;;  %v802_v57 = vpop.permute.xlu0 %801 }
 0x1ad   :  { %v844_v58 = vmax.f32 %v780_v54, %v804_v56  ;;  %v843_v59 = vmax.f32 %v779_v55, %v802_v57 }
 0x1af   :  { %885 = vperm.xlu1 %2361, %v843_v59   ;;  %890 = vperm.xlu0 %2360, %v844_v58  }
 0x1b0   :  { %v744_v60 = vpop.permute.xlu1 %743  ;;  %v742_v62 = vpop.permute.xlu0 %741 }
 0x1b1   :  { %v782_v63 = vmax.f32 %v2748_v20, %v744_v60  ;;  %v781_v1 = vmax.f32 %v2750_v21, %v742_v62 }
 0x1b4   :  { %v808_v2 = vpop.permute.xlu1 %807  ;;  %v806_v5 = vpop.permute.xlu0 %805 }
 0x1b5   :  { %v846_v6 = vmax.f32 %v782_v63, %v808_v2  ;;  %v845_v7 = vmax.f32 %v781_v1, %v806_v5 }
 0x1b7   :  { %895 = vperm.xlu1 %2361, %v845_v7   ;;  %900 = vperm.xlu0 %2360, %v846_v6  }
 0x1b8   :  { %v748_v8 = vpop.permute.xlu1 %747  ;;  %v746_v11 = vpop.permute.xlu0 %745 }
 0x1b9   :  { %v784_v12 = vmax.f32 %v2760_v22, %v748_v8  ;;  %v783_v13 = vmax.f32 %v2762_v23, %v746_v11 }
 0x1bc   :  { %v812_v14 = vpop.permute.xlu1 %811  ;;  %v810_v17 = vpop.permute.xlu0 %809 }
 0x1bd   :  { %v848_v18 = vmax.f32 %v784_v12, %v812_v14  ;;  %v847_v19 = vmax.f32 %v783_v13, %v810_v17 }
 0x1bf   :  { %905 = vperm.xlu1 %2361, %v847_v19   ;;  %910 = vperm.xlu0 %2360, %v848_v18  }
 0x1c0   :  { %v752_v28 = vpop.permute.xlu1 %751  ;;  %v750_v29 = vpop.permute.xlu0 %749 }
 0x1c1   :  { %v786_v30 = vmax.f32 %v2772_v24, %v752_v28  ;;  %v785_v31 = vmax.f32 %v2774_v25, %v750_v29 }
 0x1c4   :  { %v816_v32 = vpop.permute.xlu1 %815  ;;  %v814_v33 = vpop.permute.xlu0 %813 }
 0x1c5   :  { %v850_v34 = vmax.f32 %v786_v30, %v816_v32  ;;  %v849_v35 = vmax.f32 %v785_v31, %v814_v33 }
 0x1c7   :  { %915 = vperm.xlu1 %2361, %v849_v35   ;;  %920 = vperm.xlu0 %2360, %v850_v34  }
 0x1c8   :  { %v756_v36 = vpop.permute.xlu1 %755  ;;  %v754_v37 = vpop.permute.xlu0 %753 }
 0x1c9   :  { %v788_v38 = vmax.f32 %v2784_v26, %v756_v36  ;;  %v787_v39 = vmax.f32 %v2786_v27, %v754_v37 }
 0x1cc   :  { %v820_v40 = vpop.permute.xlu1 %819  ;;  %v818_v41 = vpop.permute.xlu0 %817 }
 0x1cd   :  { %v852_v42 = vmax.f32 %v788_v38, %v820_v40  ;;  %v851_v43 = vmax.f32 %v787_v39, %v818_v41 }
 0x1cf   :  { %930 = vperm.xlu0 %2360, %v852_v42   ;;  %925 = vperm.xlu1 %2361, %v851_v43  }
 0x214   :  { %v861_v44 = vpop.permute.xlu1 %860 }
 0x215   :  { %v934_v45 = vsub.f32 %v2700_v61, %v861_v44 }
 0x217   :  { %v951_v46 = vmul.f32 1.442695, %v934_v45 }
 0x218   :  { %v856_v47 = vpop.permute.xlu0 %855 }
 0x219   :  { %2362 = vpow2.f32 %v951_v46  ;;  %v933_v48 = vsub.f32 %v2706_v0, %v856_v47 }
 0x21b   :  { %v949_v49 = vmul.f32 1.442695, %v933_v48 }
 0x21d   :  { %2364 = vpow2.f32 %v949_v49 }
 0x21e   :  { %v866_v50 = vpop.permute.xlu1 %865  ;;  %v871_v51 = vpop.permute.xlu0 %870 }
 0x21f   :  { %v935_v52 = vsub.f32 %v2714_v4, %v866_v50  ;;  %v936_v53 = vsub.f32 %v2712_v3, %v871_v51 }
 0x221   :  { %v953_v54 = vmul.f32 1.442695, %v935_v52  ;;  %v955_v55 = vmul.f32 1.442695, %v936_v53 }
 0x223   :  { %v2816_v56 = vpop.eup %2362  ;;  %2366 = vpow2.f32 %v955_v55 }
 0x224   :  { %999 = vrot.lane.b32.xlu0 %v2816_v56, %s2428_s28  ;;  %2368 = vpow2.f32 %v953_v54 }
 0x226   :  { %v876_v57 = vpop.permute.xlu1 %875  ;;  %v881_v58 = vpop.permute.xlu0 %880 }
 0x227   :  { %v2820_v59 = vpop.eup %2364  ;;  %v937_v60 = vsub.f32 %v2726_v10, %v876_v57  ;;  %v938_v62 = vsub.f32 %v2724_v9, %v881_v58 }
 0x228   :  { %1063 = vrot.lane.b32.xlu0 %v2816_v56, %s2427_s27  ;;  %997 = vrot.lane.b32.xlu1 %v2820_v59, %s2428_s28 }
 0x229   :  { %v957_v63 = vmul.f32 1.442695, %v937_v60  ;;  %v959_v1 = vmul.f32 1.442695, %v938_v62 }
 0x22b   :  { %2370 = vpow2.f32 %v959_v1 }
 0x22c   :  { %1061 = vrot.lane.b32.xlu1 %v2820_v59, %s2427_s27  ;;  %2372 = vpow2.f32 %v957_v63 }
 0x22d   :  { %v2830_v2 = vpop.eup %2366 }
 0x22e   :  { %v886_v5 = vpop.permute.xlu1 %885  ;;  %v891_v6 = vpop.permute.xlu0 %890  ;;  %1003 = vrot.lane.b32.xlu0 %v2830_v2, %s2428_s28 }
 0x22f   :  { %v2832_v7 = vpop.eup %2368  ;;  %v939_v8 = vsub.f32 %v2738_v16, %v886_v5  ;;  %v940_v11 = vsub.f32 %v2736_v15, %v891_v6 }
 0x230   :  { %1001 = vrot.lane.b32.xlu1 %v2832_v7, %s2428_s28 }
 0x231   :  { %v961_v12 = vmul.f32 1.442695, %v939_v8  ;;  %v963_v13 = vmul.f32 1.442695, %v940_v11 }
 0x232   :  { %1067 = vrot.lane.b32.xlu0 %v2830_v2, %s2427_s27 }
 0x233   :  { %2374 = vpow2.f32 %v963_v13 }
 0x234   :  { %1065 = vrot.lane.b32.xlu1 %v2832_v7, %s2427_s27  ;;  %2376 = vpow2.f32 %v961_v12 }
 0x235   :  { %v2844_v14 = vpop.eup %2370 }
 0x236   :  { %v896_v17 = vpop.permute.xlu1 %895  ;;  %v901_v18 = vpop.permute.xlu0 %900  ;;  %1007 = vrot.lane.b32.xlu0 %v2844_v14, %s2428_s28 }
 0x237   :  { %v2846_v19 = vpop.eup %2372  ;;  %v941_v28 = vsub.f32 %v2750_v21, %v896_v17  ;;  %v942_v29 = vsub.f32 %v2748_v20, %v901_v18 }
 0x238   :  { %1005 = vrot.lane.b32.xlu1 %v2846_v19, %s2428_s28 }
 0x239   :  { %v965_v30 = vmul.f32 1.442695, %v941_v28  ;;  %v967_v31 = vmul.f32 1.442695, %v942_v29 }
 0x23a   :  { %1071 = vrot.lane.b32.xlu0 %v2844_v14, %s2427_s27 }
 0x23b   :  { %2378 = vpow2.f32 %v967_v31 }
 0x23c   :  { %1069 = vrot.lane.b32.xlu1 %v2846_v19, %s2427_s27  ;;  %2380 = vpow2.f32 %v965_v30 }
 0x23d   :  { %v2858_v32 = vpop.eup %2374 }
 0x23e   :  { %v906_v33 = vpop.permute.xlu1 %905  ;;  %v911_v34 = vpop.permute.xlu0 %910  ;;  %1011 = vrot.lane.b32.xlu0 %v2858_v32, %s2428_s28 }
 0x23f   :  { %v2860_v35 = vpop.eup %2376  ;;  %v943_v36 = vsub.f32 %v2762_v23, %v906_v33  ;;  %v944_v37 = vsub.f32 %v2760_v22, %v911_v34 }
 0x240   :  { %1009 = vrot.lane.b32.xlu1 %v2860_v35, %s2428_s28 }
 0x241   :  { %v969_v38 = vmul.f32 1.442695, %v943_v36  ;;  %v971_v39 = vmul.f32 1.442695, %v944_v37 }
 0x242   :  { %1075 = vrot.lane.b32.xlu0 %v2858_v32, %s2427_s27 }
 0x243   :  { %2382 = vpow2.f32 %v971_v39 }
 0x244   :  { %1073 = vrot.lane.b32.xlu1 %v2860_v35, %s2427_s27  ;;  %2384 = vpow2.f32 %v969_v38  ;;  %v1237_v38 = vld [vmem:[%s3164_s6] sm:$0x7] }
 0x245   :  { %v2872_v40 = vpop.eup %2378  ;;  %2111 = vmatprep.subr.msk.mxu1 %vm1287_vm3, %v1237_v38 }
 0x246   :  { %v916_v41 = vpop.permute.xlu1 %915  ;;  %v921_v42 = vpop.permute.xlu0 %920  ;;  %1015 = vrot.lane.b32.xlu0 %v2872_v40, %s2428_s28  ;;  %2112 = vmatpush3.msk.msra.mxu1 %vm1287_vm3, %v1237_v38 }
 0x247   :  { %v2874_v43 = vpop.eup %2380  ;;  %v945_v44 = vsub.f32 %v2774_v25, %v916_v41  ;;  %v946_v45 = vsub.f32 %v2772_v24, %v921_v42 }
 0x248   :  { %1013 = vrot.lane.b32.xlu1 %v2874_v43, %s2428_s28 }
 0x249   :  { %v973_v46 = vmul.f32 1.442695, %v945_v44  ;;  %v975_v47 = vmul.f32 1.442695, %v946_v45 }
 0x24a   :  { %1079 = vrot.lane.b32.xlu0 %v2872_v40, %s2427_s27 }
 0x24b   :  { %2386 = vpow2.f32 %v975_v47 }
 0x24c   :  { %1077 = vrot.lane.b32.xlu1 %v2874_v43, %s2427_s27  ;;  %2388 = vpow2.f32 %v973_v46 }
 0x24d   :  { %v2886_v48 = vpop.eup %2382 }
 0x24e   :  { %v926_v49 = vpop.permute.xlu1 %925  ;;  %v931_v50 = vpop.permute.xlu0 %930  ;;  %1019 = vrot.lane.b32.xlu0 %v2886_v48, %s2428_s28 }
 0x24f   :  { %v2888_v51 = vpop.eup %2384  ;;  %v947_v52 = vsub.f32 %v2786_v27, %v926_v49  ;;  %v948_v53 = vsub.f32 %v2784_v26, %v931_v50 }
 0x250   :  { %1017 = vrot.lane.b32.xlu1 %v2888_v51, %s2428_s28 }
 0x251   :  { %v977_v54 = vmul.f32 1.442695, %v947_v52  ;;  %v979_v55 = vmul.f32 1.442695, %v948_v53 }
 0x252   :  { %1083 = vrot.lane.b32.xlu0 %v2886_v48, %s2427_s27 }
 0x253   :  { %2390 = vpow2.f32 %v979_v55 }
 0x254   :  { %1081 = vrot.lane.b32.xlu1 %v2888_v51, %s2427_s27  ;;  %2392 = vpow2.f32 %v977_v54 }
 0x255   :  { %v2900_v57 = vpop.eup %2386 }
 0x256   :  { %v2902_v58 = vpop.eup %2388  ;;  %1023 = vrot.lane.b32.xlu0 %v2900_v57, %s2428_s28 }
 0x258   :  { %1021 = vrot.lane.b32.xlu1 %v2902_v58, %s2428_s28 }
 0x25a   :  { %1087 = vrot.lane.b32.xlu0 %v2900_v57, %s2427_s27 }
 0x25c   :  { %1085 = vrot.lane.b32.xlu1 %v2902_v58, %s2427_s27 }
 0x25d   :  { %v2912_v60 = vpop.eup %2390 }
 0x25e   :  { %v2914_v62 = vpop.eup %2392  ;;  %1027 = vrot.lane.b32.xlu0 %v2912_v60, %s2428_s28 }
 0x260   :  { %1025 = vrot.lane.b32.xlu1 %v2914_v62, %s2428_s28 }
 0x262   :  { %1091 = vrot.lane.b32.xlu0 %v2912_v60, %s2427_s27 }
 0x264   :  { %1089 = vrot.lane.b32.xlu1 %v2914_v62, %s2427_s27 }
 0x296   :  { %v1000_v63 = vpop.permute.xlu0 %999 }
 0x297   :  { %v1046_v1 = vadd.f32 %v2816_v56, %v1000_v63 }
 0x29a   :  { %v998_v5 = vpop.permute.xlu1 %997  ;;  %v1064_v6 = vpop.permute.xlu0 %1063 }
 0x29b   :  { %v1110_v8 = vadd.f32 %v1064_v6, %v1046_v1  ;;  %v1045_v11 = vadd.f32 %v2820_v59, %v998_v5 }
 0x29d   :  { %1132 = vperm.xlu0 %2360, %v1110_v8  }
 0x29e   :  { %v1062_v12 = vpop.permute.xlu1 %1061 }
 0x29f   :  { %v1109_v13 = vadd.f32 %v1062_v12, %v1045_v11 }
 0x2a0   :  { %v1004_v17 = vpop.permute.xlu0 %1003 }
 0x2a1   :  { %1127 = vperm.xlu1 %2361, %v1109_v13   ;;  %v1048_v28 = vadd.f32 %v2830_v2, %v1004_v17 }
 0x2a2   :  { %v1002_v18 = vpop.permute.xlu1 %1001 }
 0x2a3   :  { %v1047_v29 = vadd.f32 %v2832_v7, %v1002_v18 }
 0x2a4   :  { %v1068_v30 = vpop.permute.xlu0 %1067 }
 0x2a5   :  { %v1112_v31 = vadd.f32 %v1068_v30, %v1048_v28 }
 0x2a6   :  { %v1066_v33 = vpop.permute.xlu1 %1065 }
 0x2a7   :  { %v1111_v34 = vadd.f32 %v1066_v33, %v1047_v29  ;;  %1142 = vperm.xlu0 %2360, %v1112_v31  }
 0x2a8   :  { %v1008_v36 = vpop.permute.xlu0 %1007 }
 0x2a9   :  { %1137 = vperm.xlu1 %2361, %v1111_v34   ;;  %v1050_v39 = vadd.f32 %v2844_v14, %v1008_v36 }
 0x2aa   :  { %v1006_v37 = vpop.permute.xlu1 %1005 }
 0x2ab   :  { %v1049_v41 = vadd.f32 %v2846_v19, %v1006_v37 }
 0x2ac   :  { %v1072_v42 = vpop.permute.xlu0 %1071 }
 0x2ad   :  { %v1114_v44 = vadd.f32 %v1072_v42, %v1050_v39 }
 0x2ae   :  { %v1070_v45 = vpop.permute.xlu1 %1069 }
 0x2af   :  { %v1113_v46 = vadd.f32 %v1070_v45, %v1049_v41  ;;  %1152 = vperm.xlu0 %2360, %v1114_v44  }
 0x2b0   :  { %v1012_v47 = vpop.permute.xlu0 %1011 }
 0x2b1   :  { %1147 = vperm.xlu1 %2361, %v1113_v46   ;;  %v1052_v50 = vadd.f32 %v2858_v32, %v1012_v47 }
 0x2b2   :  { %v1010_v49 = vpop.permute.xlu1 %1009 }
 0x2b3   :  { %v1051_v52 = vadd.f32 %v2860_v35, %v1010_v49 }
 0x2b4   :  { %v1076_v53 = vpop.permute.xlu0 %1075 }
 0x2b5   :  { %v1116_v54 = vadd.f32 %v1076_v53, %v1052_v50 }
 0x2b6   :  { %v1074_v55 = vpop.permute.xlu1 %1073 }
 0x2b7   :  { %v1115_v63 = vadd.f32 %v1074_v55, %v1051_v52  ;;  %1162 = vperm.xlu0 %2360, %v1116_v54  }
 0x2b8   :  { %v1016_v1 = vpop.permute.xlu0 %1015 }
 0x2b9   :  { %1157 = vperm.xlu1 %2361, %v1115_v63   ;;  %v1054_v6 = vadd.f32 %v2872_v40, %v1016_v1  ;;  %v1452_v1 = vld [vmem:[%s3165_s7] sm:$0xff] }
 0x2ba   :  { %v1014_v5 = vpop.permute.xlu1 %1013 }
 0x2bb   :  { %v1053_v8 = vadd.f32 %v2874_v43, %v1014_v5  ;;  %v1453_v5 = vld [vmem:[%s3165_s7 + $0x8] sm:$0xff] }
 0x2bc   :  { %v1080_v11 = vpop.permute.xlu0 %1079 }
 0x2bd   :  { %v1118_v12 = vadd.f32 %v1080_v11, %v1054_v6  ;;  %v2261_v6 = vpack.c.bf16 %v1453_v5, %v1452_v1 }
 0x2be   :  { %v1078_v13 = vpop.permute.xlu1 %1077 }
 0x2bf   :  { %v1117_v17 = vadd.f32 %v1078_v13, %v1053_v8  ;;  %1172 = vperm.xlu0 %2360, %v1118_v12   ;;  %2262 = vmatprep.subr.bf16.mxu1 %v2261_v6 }
 0x2c0   :  { %v1020_v18 = vpop.permute.xlu0 %1019 }
 0x2c1   :  { %1167 = vperm.xlu1 %2361, %v1117_v17   ;;  %v1056_v29 = vadd.f32 %v2886_v48, %v1020_v18  ;;  %v1454_v18 = vld [vmem:[%s3165_s7 + $0x10] sm:$0xff] }
 0x2c2   :  { %v1018_v28 = vpop.permute.xlu1 %1017 }
 0x2c3   :  { %v1055_v30 = vadd.f32 %v2888_v51, %v1018_v28  ;;  %v1455_v28 = vld [vmem:[%s3165_s7 + $0x18] sm:$0xff] }
 0x2c4   :  { %v1084_v31 = vpop.permute.xlu0 %1083 }
 0x2c5   :  { %v1120_v33 = vadd.f32 %v1084_v31, %v1056_v29 }
 0x2c6   :  { %v1082_v34 = vpop.permute.xlu1 %1081 }
 0x2c7   :  { %v1119_v36 = vadd.f32 %v1082_v34, %v1055_v30  ;;  %1182 = vperm.xlu0 %2360, %v1120_v33   ;;  %v2265_v33 = vpack.c.bf16 %v1455_v28, %v1454_v18  ;;  %v1456_v34 = vld [vmem:[%s3165_s7 + $0x20] sm:$0xff] }
 0x2c8   :  { %v1024_v37 = vpop.permute.xlu0 %1023 }
 0x2c9   :  { %1177 = vperm.xlu1 %2361, %v1119_v36   ;;  %v1058_v39 = vadd.f32 %v2900_v57, %v1024_v37  ;;  %v1457_v36 = vld [vmem:[%s3165_s7 + $0x28] sm:$0xff] }
 0x2ca   :  { %v1022_v38 = vpop.permute.xlu1 %1021 }
 0x2cb   :  { %v1057_v41 = vadd.f32 %v2902_v58, %v1022_v38 }
 0x2cc   :  { %v1088_v42 = vpop.permute.xlu0 %1087 }
 0x2cd   :  { %v1122_v44 = vadd.f32 %v1088_v42, %v1058_v39  ;;  %v1458_v39 = vld [vmem:[%s3165_s7 + $0x30] sm:$0xff] }
 0x2ce   :  { %v1086_v45 = vpop.permute.xlu1 %1085 }
 0x2cf   :  { %v1121_v46 = vadd.f32 %v1086_v45, %v1057_v41  ;;  %1192 = vperm.xlu0 %2360, %v1122_v44   ;;  %v1459_v41 = vld [vmem:[%s3165_s7 + $0x38] sm:$0xff] }
 0x2d0   :  { %v1028_v47 = vpop.permute.xlu0 %1027 }
 0x2d1   :  { %1187 = vperm.xlu1 %2361, %v1121_v46   ;;  %v1060_v50 = vadd.f32 %v2912_v60, %v1028_v47  ;;  %v2273_v46 = vpack.c.bf16 %v1459_v41, %v1458_v39  ;;  %v1460_v47 = vld [vmem:[%s3165_s7 + $0x40] sm:$0xff] }
 0x2d2   :  { %v1026_v49 = vpop.permute.xlu1 %1025 }
 0x2d3   :  { %v1059_v52 = vadd.f32 %v2914_v62, %v1026_v49  ;;  %v1461_v49 = vld [vmem:[%s3165_s7 + $0x48] sm:$0xff] }
 0x2d4   :  { %v1092_v53 = vpop.permute.xlu0 %1091 }
 0x2d5   :  { %v1124_v54 = vadd.f32 %v1092_v53, %v1060_v50  ;;  %v1462_v53 = vld [vmem:[%s3165_s7 + $0x50] sm:$0xff] }
 0x2d6   :  { %v1090_v55 = vpop.permute.xlu1 %1089 }
 0x2d7   :  { %v1123_v63 = vadd.f32 %v1090_v55, %v1059_v52  ;;  %1202 = vperm.xlu0 %2360, %v1124_v54   ;;  %v1463_v54 = vld [vmem:[%s3165_s7 + $0x58] sm:$0xff] }
 0x2d8   :  { %v2281_v5 = vpack.c.bf16 %v1463_v54, %v1462_v53 }
 0x2d9   :  { %1197 = vperm.xlu1 %2361, %v1123_v63  }
 0x31c   :  { %v1133_v8 = vpop.permute.xlu0 %1132 }
 0x31d   :  { %2394 = vrcp.f32 %v1133_v8  ;;  %v1465_v8 = vld [vmem:[%s3165_s7 + $0x68] sm:$0xff] }
 0x320   :  { %v1128_v11 = vpop.permute.xlu1 %1127 }
 0x321   :  { %2396 = vrcp.f32 %v1128_v11 }
 0x326   :  { %v1143_v12 = vpop.permute.xlu0 %1142 }
 0x327   :  { %2398 = vrcp.f32 %v1143_v12  ;;  %v2395_v17 = vpop.eup %2394 }
 0x328   :  { %v1138_v13 = vpop.permute.xlu1 %1137  ;;  %v1208_v31 = vmul.f32 %v2395_v17, %v2816_v56  ;;  %v2269_v56 = vpack.c.bf16 %v1457_v36, %v1456_v34 }
 0x329   :  { %2400 = vrcp.f32 %v1138_v13 }
 0x32b   :  { %v2397_v29 = vpop.eup %2396 }
 0x32c   :  { %v1206_v30 = vmul.f32 %v2397_v29, %v2820_v59 }
 0x32e   :  { %2113 = vmatprep.mubr.msk.f32.mxu1 %vm1238_vm4, %v1206_v30  ;;  %v1153_v37 = vpop.permute.xlu0 %1152 }
 0x32f   :  { %2114 = vmatmul.mubr.msk.f32.vlgmr.msra.gmra.mrb[0].mxu1 %vm1238_vm4, %v1208_v31  ;;  %2402 = vrcp.f32 %v1153_v37 }
 0x330   :  { %v1148_v38 = vpop.permute.xlu1 %1147  ;;  %2264 = vmatpush3.bf16.msra.mxu1 %v2261_v6  ;;  %v1464_v6 = vld [vmem:[%s3165_s7 + $0x60] sm:$0xff] }
 0x331   :  { %2404 = vrcp.f32 %v1148_v38  ;;  %2266 = vmatprep.subr.bf16.mxu1 %v2265_v33  ;;  %v2399_v59 = vpop.eup %2398 }
 0x332   :  { %v1212_v45 = vmul.f32 %v2399_v59, %v2830_v2  ;;  %v2277_v2 = vpack.c.bf16 %v1461_v49, %v1460_v47 }
 0x333   :  { %v2401_v42 = vpop.eup %2400 }
 0x334   :  { %v1210_v44 = vmul.f32 %v2401_v42, %v2832_v7  ;;  %2268 = vmatpush3.bf16.msra.mxu1 %v2265_v33 }
 0x335   :  { %2270 = vmatprep.subr.bf16.mxu1 %v2269_v56 }
 0x336   :  { %2116 = vmatprep.mubr.msk.f32.mxu1 %vm1238_vm4, %v1210_v44  ;;  %v1163_v50 = vpop.permute.xlu0 %1162 }
 0x337   :  { %2117 = vmatmul.mubr.msk.f32.gmra.mrb[2].mxu1 %vm1238_vm4, %v1212_v45  ;;  %2406 = vrcp.f32 %v1163_v50  ;;  %v1636_v50 = vld [vmem:[%s3166_s8 + $0x10] sm:$0xff] }
 0x338   :  { %v1158_v7 = vpop.permute.xlu1 %1157  ;;  %2272 = vmatpush3.bf16.msra.mxu1 %v2269_v56 }
 0x339   :  { %2408 = vrcp.f32 %v1158_v7  ;;  %2274 = vmatprep.subr.bf16.mxu1 %v2273_v46  ;;  %v2403_v52 = vpop.eup %2402  ;;  %v1637_v7 = vld [vmem:[%s3166_s8 + $0x18] sm:$0xff] }
 0x33a   :  { %v1216_v1 = vmul.f32 %v2403_v52, %v2844_v14  ;;  %v2285_v14 = vpack.c.bf16 %v1465_v8, %v1464_v6  ;;  %v2297_v54 = vpack.c.bf16 %v1637_v7, %v1636_v50 }
 0x33b   :  { %v2405_v55 = vpop.eup %2404 }
 0x33c   :  { %v1214_v63 = vmul.f32 %v2405_v55, %v2846_v19  ;;  %2276 = vmatpush3.bf16.msra.mxu1 %v2273_v46  ;;  %v1638_v55 = vld [vmem:[%s3166_s8 + $0x20] sm:$0xff] }
 0x33d   :  { %2278 = vmatprep.subr.bf16.mxu1 %v2277_v2 }
 0x33e   :  { %2119 = vmatprep.mubr.msk.f32.mxu1 %vm1238_vm4, %v1214_v63  ;;  %v1173_v11 = vpop.permute.xlu0 %1172  ;;  %v1639_v63 = vld [vmem:[%s3166_s8 + $0x28] sm:$0xff] }
 0x33f   :  { %2120 = vmatmul.mubr.msk.f32.gmra.mrb[4].mxu1 %vm1238_vm4, %v1216_v1  ;;  %2410 = vrcp.f32 %v1173_v11  ;;  %v2301_v1 = vpack.c.bf16 %v1639_v63, %v1638_v55 }
 0x340   :  { %v1168_v19 = vpop.permute.xlu1 %1167  ;;  %2280 = vmatpush3.bf16.msra.mxu1 %v2277_v2 }
 0x341   :  { %2412 = vrcp.f32 %v1168_v19  ;;  %2282 = vmatprep.subr.bf16.mxu1 %v2281_v5  ;;  %v2407_v12 = vpop.eup %2406 }
 0x342   :  { %v1220_v18 = vmul.f32 %v2407_v12, %v2858_v32  ;;  %v1643_v12 = vld [vmem:[%s3166_s8 + $0x48] sm:$0xff] }
 0x343   :  { %v2409_v13 = vpop.eup %2408 }
 0x344   :  { %v1218_v17 = vmul.f32 %v2409_v13, %v2860_v35  ;;  %2284 = vmatpush3.bf16.msra.mxu1 %v2281_v5 }
 0x345   :  { %2286 = vmatprep.subr.bf16.mxu1 %v2285_v14 }
 0x346   :  { %2122 = vmatprep.mubr.msk.f32.mxu1 %vm1238_vm4, %v1218_v17  ;;  %v1183_v28 = vpop.permute.xlu0 %1182 }
 0x347   :  { %2123 = vmatmul.mubr.msk.f32.gmra.mrb[6].mxu1 %vm1238_vm4, %v1220_v18  ;;  %2414 = vrcp.f32 %v1183_v28 }
 0x348   :  { %v1178_v29 = vpop.permute.xlu1 %1177  ;;  %2288 = vmatpush3.bf16.msra.mxu1 %v2285_v14  ;;  %v1642_v14 = vld [vmem:[%s3166_s8 + $0x40] sm:$0xff] }
 0x349   :  { %2416 = vrcp.f32 %v1178_v29  ;;  %v2411_v30 = vpop.eup %2410  ;;  %v2309_v13 = vpack.c.bf16 %v1643_v12, %v1642_v14 }
 0x34a   :  { %v1224_v34 = vmul.f32 %v2411_v30, %v2872_v40 }
 0x34b   :  { %v2413_v31 = vpop.eup %2412 }
 0x34c   :  { %v1222_v33 = vmul.f32 %v2413_v31, %v2874_v43  ;;  %v1646_v31 = vld [vmem:[%s3166_s8 + $0x60] sm:$0xff] }
 0x34e   :  { %2125 = vmatprep.mubr.msk.f32.mxu1 %vm1238_vm4, %v1222_v33  ;;  %v1193_v35 = vpop.permute.xlu0 %1192  ;;  %v1647_v33 = vld [vmem:[%s3166_s8 + $0x68] sm:$0xff] }
 0x34f   :  { %2126 = vmatmul.mubr.msk.f32.gmra.mrb[8].mxu1 %vm1238_vm4, %v1224_v34  ;;  %2418 = vrcp.f32 %v1193_v35  ;;  %v2317_v34 = vpack.c.bf16 %v1647_v33, %v1646_v31 }
 0x350   :  { %v1188_v32 = vpop.permute.xlu1 %1187 }
 0x351   :  { %2420 = vrcp.f32 %v1188_v32  ;;  %v2415_v36 = vpop.eup %2414 }
 0x352   :  { %v1228_v56 = vmul.f32 %v2415_v36, %v2886_v48 }
 0x353   :  { %v2417_v37 = vpop.eup %2416 }
 0x354   :  { %v1226_v38 = vmul.f32 %v2417_v37, %v2888_v51 }
 0x356   :  { %2128 = vmatprep.mubr.msk.f32.mxu1 %vm1238_vm4, %v1226_v38  ;;  %v1203_v59 = vpop.permute.xlu0 %1202 }
 0x357   :  { %2129 = vmatmul.mubr.msk.f32.gmra.mrb[10].mxu1 %vm1238_vm4, %v1228_v56  ;;  %2422 = vrcp.f32 %v1203_v59 }
 0x358   :  { %v1198_v40 = vpop.permute.xlu1 %1197 }
 0x359   :  { %2424 = vrcp.f32 %v1198_v40  ;;  %v2419_v43 = vpop.eup %2418 }
 0x35a   :  { %v1232_v42 = vmul.f32 %v2419_v43, %v2900_v57  ;;  %v1467_v57 = vld [vmem:[%s3165_s7 + $0x78] sm:$0xff] }
 0x35b   :  { %v2421_v39 = vpop.eup %2420 }
 0x35c   :  { %v1230_v41 = vmul.f32 %v2421_v39, %v2902_v58  ;;  %v1466_v58 = vld [vmem:[%s3165_s7 + $0x70] sm:$0xff] }
 0x35d   :  { %v2289_v46 = vpack.c.bf16 %v1467_v57, %v1466_v58 }
 0x35e   :  { %2131 = vmatprep.mubr.msk.f32.mxu1 %vm1238_vm4, %v1230_v41 }
 0x35f   :  { %2132 = vmatmul.mubr.msk.f32.gmra.mrb[12].mxu1 %vm1238_vm4, %v1232_v42  ;;  %2290 = vmatprep.subr.bf16.mxu1 %v2289_v46 }
 0x360   :  { %2292 = vmatpush3.bf16.msra.mxu1 %v2289_v46 }
 0x361   :  { %v2423_v51 = vpop.eup %2422 }
 0x362   :  { %v1236_v45 = vmul.f32 %v2423_v51, %v2912_v60  ;;  %v1635_v60 = vld [vmem:[%s3166_s8 + $0x8] sm:$0xff] }
 0x363   :  { %v2425_v48 = vpop.eup %2424 }
 0x364   :  { %v1234_v44 = vmul.f32 %v2425_v48, %v2914_v62  ;;  %v1634_v62 = vld [vmem:[%s3166_s8] sm:$0xff] }
 0x365   :  { %v2293_v47 = vpack.c.bf16 %v1635_v60, %v1634_v62 }
 0x366   :  { %2134 = vmatprep.mubr.msk.f32.mxu1 %vm1238_vm4, %v1234_v44 }
 0x367   :  { %2135 = vmatmul.mubr.msk.f32.gmra.mrb[14].mxu1 %vm1238_vm4, %v1236_v45  ;;  %2294 = vmatprep.subr.bf16.mxu1 %v2293_v47 }
 0x402   :  { %v2115_v49 = vpop.f32.mrb[0].mxu1 }
 0x403   :  { %v1357_v2 = vpop.f32.mrb[1].mxu1  ;;  %v1437_v53 = vmul.f32 %v2115_v49, %v2700_v61  ;;  %v1641_v61 = vld [vmem:[%s3166_s8 + $0x38] sm:$0xff] }
 0x404   :  { %v1436_v52 = vmul.f32 %v1357_v2, %v2706_v0  ;;  %v1640_v0 = vld [vmem:[%s3166_s8 + $0x30] sm:$0xff] }
 0x405   :  { %v2305_v19 = vpack.c.bf16 %v1641_v61, %v1640_v0 }
 0x406   :  { %2169 = vmatprep.mubr.f32.mxu1 %v1436_v52 }
 0x407   :  { %2170 = vmatmul.mubr.f32.vlgmr.msra.gmra.mrb[16].mxu1 %v1437_v53 }
 0x408   :  { %2296 = vmatpush3.bf16.msra.mxu1 %v2293_v47 }
 0x409   :  { %2298 = vmatprep.subr.bf16.mxu1 %v2297_v54 }
 0x40a   :  { %v2118_v5 = vpop.f32.mrb[2].mxu1 }
 0x40b   :  { %v1367_v6 = vpop.f32.mrb[3].mxu1  ;;  %v1439_v11 = vmul.f32 %v2118_v5, %v2712_v3  ;;  %v1644_v3 = vld [vmem:[%s3166_s8 + $0x50] sm:$0xff] }
 0x40c   :  { %v1438_v8 = vmul.f32 %v1367_v6, %v2714_v4  ;;  %2300 = vmatpush3.bf16.msra.mxu1 %v2297_v54  ;;  %v1645_v4 = vld [vmem:[%s3166_s8 + $0x58] sm:$0xff] }
 0x40d   :  { %2302 = vmatprep.subr.bf16.mxu1 %v2301_v1  ;;  %v2313_v30 = vpack.c.bf16 %v1645_v4, %v1644_v3 }
 0x40e   :  { %2172 = vmatprep.mubr.f32.mxu1 %v1438_v8 }
 0x40f   :  { %2173 = vmatmul.mubr.f32.gmra.mrb[18].mxu1 %v1439_v11 }
 0x410   :  { %2304 = vmatpush3.bf16.msra.mxu1 %v2301_v1 }
 0x411   :  { %2306 = vmatprep.subr.bf16.mxu1 %v2305_v19 }
 0x412   :  { %v2121_v17 = vpop.f32.mrb[4].mxu1 }
 0x413   :  { %v1377_v18 = vpop.f32.mrb[5].mxu1  ;;  %v1441_v29 = vmul.f32 %v2121_v17, %v2724_v9 }
 0x414   :  { %v1440_v28 = vmul.f32 %v1377_v18, %v2726_v10  ;;  %2308 = vmatpush3.bf16.msra.mxu1 %v2305_v19 }
 0x415   :  { %2310 = vmatprep.subr.bf16.mxu1 %v2309_v13 }
 0x416   :  { %2175 = vmatprep.mubr.f32.mxu1 %v1440_v28 }
 0x417   :  { %2176 = vmatmul.mubr.f32.gmra.mrb[20].mxu1 %v1441_v29 }
 0x418   :  { %2312 = vmatpush3.bf16.msra.mxu1 %v2309_v13 }
 0x419   :  { %2314 = vmatprep.subr.bf16.mxu1 %v2313_v30 }
 0x41a   :  { %v2124_v35 = vpop.f32.mrb[6].mxu1 }
 0x41b   :  { %v1387_v10 = vpop.f32.mrb[7].mxu1  ;;  %v1443_v9 = vmul.f32 %v2124_v35, %v2736_v15 }
 0x41c   :  { %v1442_v32 = vmul.f32 %v1387_v10, %v2738_v16  ;;  %2316 = vmatpush3.bf16.msra.mxu1 %v2313_v30 }
 0x41d   :  { %2318 = vmatprep.subr.bf16.mxu1 %v2317_v34 }
 0x41e   :  { %2178 = vmatprep.mubr.f32.mxu1 %v1442_v32 }
 0x41f   :  { %2179 = vmatmul.mubr.f32.gmra.mrb[22].mxu1 %v1443_v9 }
 0x420   :  { %2320 = vmatpush3.bf16.msra.mxu1 %v2317_v34 }
 0x422   :  { %v2127_v36 = vpop.f32.mrb[8].mxu1 }
 0x423   :  { %v1397_v37 = vpop.f32.mrb[9].mxu1  ;;  %v1445_v56 = vmul.f32 %v2127_v36, %v2748_v20 }
 0x424   :  { %v1444_v38 = vmul.f32 %v1397_v37, %v2750_v21 }
 0x426   :  { %2181 = vmatprep.mubr.f32.mxu1 %v1444_v38 }
 0x427   :  { %2182 = vmatmul.mubr.f32.gmra.mrb[24].mxu1 %v1445_v56 }
 0x42a   :  { %v2130_v59 = vpop.f32.mrb[10].mxu1 }
 0x42b   :  { %v1407_v40 = vpop.f32.mrb[11].mxu1  ;;  %v1447_v16 = vmul.f32 %v2130_v59, %v2760_v22  ;;  %v1648_v22 = vld [vmem:[%s3166_s8 + $0x70] sm:$0xff]  ;;  %v1888_v59 = vld [vmem:[%s3163_s9 + $0x2] ss:$0 sm:$0xff] }
 0x42c   :  { %v1446_v43 = vmul.f32 %v1407_v40, %v2762_v23  ;;  %v1649_v23 = vld [vmem:[%s3166_s8 + $0x78] sm:$0xff] }
 0x42e   :  { %2184 = vmatprep.mubr.f32.mxu1 %v1446_v43 }
 0x42f   :  { %2185 = vmatmul.mubr.f32.gmra.mrb[26].mxu1 %v1447_v16 }
 0x432   :  { %v2133_v15 = vpop.f32.mrb[12].mxu1 }
 0x433   :  { %v1417_v39 = vpop.f32.mrb[13].mxu1  ;;  %v1449_v42 = vmul.f32 %v2133_v15, %v2772_v24  ;;  %v1887_v24 = vld [vmem:[%s3163_s9 + $0x1] ss:$0 sm:$0xff] }
 0x434   :  { %v1448_v41 = vmul.f32 %v1417_v39, %v2774_v25  ;;  %v2321_v25 = vpack.c.bf16 %v1649_v23, %v1648_v22 }
 0x436   :  { %2187 = vmatprep.mubr.f32.mxu1 %v1448_v41  ;;  %2322 = vmatprep.subr.bf16.mxu1 %v2321_v25 }
 0x437   :  { %2188 = vmatmul.mubr.f32.gmra.mrb[28].mxu1 %v1449_v42 }
 0x438   :  { %2324 = vmatpush3.bf16.msra.mxu1 %v2321_v25 }
 0x43a   :  { %v2136_v21 = vpop.f32.mrb[14].mxu1 }
 0x43b   :  { %v1427_v20 = vpop.f32.mrb[15].mxu1  ;;  %v1451_v48 = vmul.f32 %v2136_v21, %v2784_v26 }
 0x43c   :  { %v1450_v51 = vmul.f32 %v1427_v20, %v2786_v27 }
 0x43e   :  { %2190 = vmatprep.mubr.f32.mxu1 %v1450_v51 }
 0x43f   :  { %2191 = vmatmul.mubr.f32.gmra.mrb[30].mxu1 %v1451_v48 }
 0x4da   :  { %v2171_v27 = vpop.f32.mrb[16].mxu1 }
 0x4db   :  { %v1545_v44 = vadd.f32 %v2171_v27, %v1887_v24  ;;  %v1539_v26 = vpop.f32.mrb[17].mxu1 }
 0x4dc   :  { %v1540_v45 = vadd.f32 %v1887_v24, %v1539_v26 }
 0x4dd   :  { %v1619_v57 = vmax.f32 %v1545_v44, 0.0 }
 0x4de   :  { %v1618_v58 = vmax.f32 %v1540_v45, 0.0 }
 0x4e0   :  { %2225 = vmatprep.mubr.f32.mxu1 %v1618_v58 }
 0x4e1   :  { %2226 = vmatmul.mubr.f32.vlgmr.msra.gmra.mrb[32].mxu1 %v1619_v57 }
 0x4e2   :  { %v2174_v46 = vpop.f32.mrb[18].mxu1 }
 0x4e3   :  { %v1555_v62 = vadd.f32 %v2174_v46, %v1887_v24  ;;  %v1549_v60 = vpop.f32.mrb[19].mxu1 }
 0x4e4   :  { %v1550_v47 = vadd.f32 %v1887_v24, %v1549_v60 }
 0x4e5   :  { %v1621_v50 = vmax.f32 %v1555_v62, 0.0 }
 0x4e6   :  { %v1620_v49 = vmax.f32 %v1550_v47, 0.0 }
 0x4e8   :  { %2228 = vmatprep.mubr.f32.mxu1 %v1620_v49 }
 0x4e9   :  { %2229 = vmatmul.mubr.f32.gmra.mrb[34].mxu1 %v1621_v50 }
 0x4ea   :  { %v2177_v7 = vpop.f32.mrb[20].mxu1 }
 0x4eb   :  { %v1565_v2 = vadd.f32 %v2177_v7, %v1887_v24  ;;  %v1559_v52 = vpop.f32.mrb[21].mxu1 }
 0x4ec   :  { %v1560_v53 = vadd.f32 %v1887_v24, %v1559_v52 }
 0x4ed   :  { %v1623_v55 = vmax.f32 %v1565_v2, 0.0 }
 0x4ee   :  { %v1622_v54 = vmax.f32 %v1560_v53, 0.0 }
 0x4f0   :  { %2231 = vmatprep.mubr.f32.mxu1 %v1622_v54 }
 0x4f1   :  { %2232 = vmatmul.mubr.f32.gmra.mrb[36].mxu1 %v1623_v55 }
 0x4f2   :  { %v2180_v63 = vpop.f32.mrb[22].mxu1 }
 0x4f3   :  { %v1575_v1 = vadd.f32 %v2180_v63, %v1887_v24  ;;  %v1569_v5 = vpop.f32.mrb[23].mxu1 }
 0x4f4   :  { %v1570_v0 = vadd.f32 %v1887_v24, %v1569_v5 }
 0x4f5   :  { %v1625_v6 = vmax.f32 %v1575_v1, 0.0 }
 0x4f6   :  { %v1624_v61 = vmax.f32 %v1570_v0, 0.0 }
 0x4f8   :  { %2234 = vmatprep.mubr.f32.mxu1 %v1624_v61 }
 0x4f9   :  { %2235 = vmatmul.mubr.f32.gmra.mrb[38].mxu1 %v1625_v6 }
 0x4fa   :  { %v2183_v8 = vpop.f32.mrb[24].mxu1 }
 0x4fb   :  { %v1585_v11 = vadd.f32 %v2183_v8, %v1887_v24  ;;  %v1579_v19 = vpop.f32.mrb[25].mxu1 }
 0x4fc   :  { %v1580_v14 = vadd.f32 %v1887_v24, %v1579_v19 }
 0x4fd   :  { %v1627_v13 = vmax.f32 %v1585_v11, 0.0 }
 0x4fe   :  { %v1626_v12 = vmax.f32 %v1580_v14, 0.0 }
 0x500   :  { %2237 = vmatprep.mubr.f32.mxu1 %v1626_v12 }
 0x501   :  { %2238 = vmatmul.mubr.f32.gmra.mrb[40].mxu1 %v1627_v13 }
 0x502   :  { %v2186_v17 = vpop.f32.mrb[26].mxu1 }
 0x503   :  { %v1595_v3 = vadd.f32 %v2186_v17, %v1887_v24  ;;  %v1589_v4 = vpop.f32.mrb[27].mxu1 }
 0x504   :  { %v1590_v18 = vadd.f32 %v1887_v24, %v1589_v4 }
 0x505   :  { %v1629_v29 = vmax.f32 %v1595_v3, 0.0 }
 0x506   :  { %v1628_v28 = vmax.f32 %v1590_v18, 0.0 }
 0x508   :  { %2240 = vmatprep.mubr.f32.mxu1 %v1628_v28 }
 0x509   :  { %2241 = vmatmul.mubr.f32.gmra.mrb[42].mxu1 %v1629_v29 }
 0x50a   :  { %v2189_v30 = vpop.f32.mrb[28].mxu1 }
 0x50b   :  { %v1605_v31 = vadd.f32 %v2189_v30, %v1887_v24  ;;  %v1599_v33 = vpop.f32.mrb[29].mxu1 }
 0x50c   :  { %v1600_v34 = vadd.f32 %v1887_v24, %v1599_v33 }
 0x50d   :  { %v1631_v10 = vmax.f32 %v1605_v31, 0.0 }
 0x50e   :  { %v1630_v35 = vmax.f32 %v1600_v34, 0.0 }
 0x510   :  { %2243 = vmatprep.mubr.f32.mxu1 %v1630_v35 }
 0x511   :  { %2244 = vmatmul.mubr.f32.gmra.mrb[44].mxu1 %v1631_v10 }
 0x512   :  { %v2192_v32 = vpop.f32.mrb[30].mxu1 }
 0x513   :  { %v1615_v9 = vadd.f32 %v2192_v32, %v1887_v24  ;;  %v1609_v36 = vpop.f32.mrb[31].mxu1 }
 0x514   :  { %v1610_v37 = vadd.f32 %v1887_v24, %v1609_v36 }
 0x515   :  { %v1633_v56 = vmax.f32 %v1615_v9, 0.0 }
 0x516   :  { %v1632_v38 = vmax.f32 %v1610_v37, 0.0 }
 0x518   :  { %2246 = vmatprep.mubr.f32.mxu1 %v1632_v38 }
 0x519   :  { %2247 = vmatmul.mubr.f32.gmra.mrb[46].mxu1 %v1633_v56 }
 0x5b4   :  { %v2227_v40 = vpop.f32.mrb[32].mxu1 }
 0x5b5   :  { %v1727_v43 = vadd.f32 %v2227_v40, %v1888_v59  ;;  %v1721_v16 = vpop.f32.mrb[33].mxu1 }
 0x5b6   :  { %v1722_v15 = vadd.f32 %v1888_v59, %v1721_v16 }
 0x5b7   :  { %1802 = vst.msk [vmem:[%s3167_s10 + $0x8] sm:$0xff] %vm1800_vm5, %v1727_v43 }
 0x5b8   :  { %1801 = vst.msk [vmem:[%s3167_s10] sm:$0xff] %vm1800_vm5, %v1722_v15 }
 0x5bc   :  { %v2230_v39 = vpop.f32.mrb[34].mxu1 }
 0x5bd   :  { %v1737_v41 = vadd.f32 %v2230_v39, %v1888_v59  ;;  %v1731_v42 = vpop.f32.mrb[35].mxu1 }
 0x5be   :  { %v1732_v21 = vadd.f32 %v1888_v59, %v1731_v42 }
 0x5bf   :  { %1804 = vst.msk [vmem:[%s3167_s10 + $0x18] sm:$0xff] %vm1800_vm5, %v1737_v41 }
 0x5c0   :  { %1803 = vst.msk [vmem:[%s3167_s10 + $0x10] sm:$0xff] %vm1800_vm5, %v1732_v21 }
 0x5c4   :  { %v2233_v20 = vpop.f32.mrb[36].mxu1 }
 0x5c5   :  { %v1747_v51 = vadd.f32 %v2233_v20, %v1888_v59  ;;  %v1741_v48 = vpop.f32.mrb[37].mxu1 }
 0x5c6   :  { %v1742_v22 = vadd.f32 %v1888_v59, %v1741_v48 }
 0x5c7   :  { %1806 = vst.msk [vmem:[%s3167_s10 + $0x28] sm:$0xff] %vm1800_vm5, %v1747_v51 }
 0x5c8   :  { %1805 = vst.msk [vmem:[%s3167_s10 + $0x20] sm:$0xff] %vm1800_vm5, %v1742_v22 }
 0x5cc   :  { %v2236_v23 = vpop.f32.mrb[38].mxu1 }
 0x5cd   :  { %v1757_v25 = vadd.f32 %v2236_v23, %v1888_v59  ;;  %v1751_v24 = vpop.f32.mrb[39].mxu1 }
 0x5ce   :  { %v1752_v27 = vadd.f32 %v1888_v59, %v1751_v24 }
 0x5cf   :  { %1808 = vst.msk [vmem:[%s3167_s10 + $0x38] sm:$0xff] %vm1800_vm5, %v1757_v25 }
 0x5d0   :  { %1807 = vst.msk [vmem:[%s3167_s10 + $0x30] sm:$0xff] %vm1800_vm5, %v1752_v27 }
 0x5d4   :  { %v2239_v44 = vpop.f32.mrb[40].mxu1 }
 0x5d5   :  { %v1767_v26 = vadd.f32 %v2239_v44, %v1888_v59  ;;  %v1761_v45 = vpop.f32.mrb[41].mxu1 }
 0x5d6   :  { %v1762_v58 = vadd.f32 %v1888_v59, %v1761_v45 }
 0x5d7   :  { %1810 = vst.msk [vmem:[%s3167_s10 + $0x48] sm:$0xff] %vm1800_vm5, %v1767_v26 }
 0x5d8   :  { %1809 = vst.msk [vmem:[%s3167_s10 + $0x40] sm:$0xff] %vm1800_vm5, %v1762_v58 }
 0x5dc   :  { %v2242_v57 = vpop.f32.mrb[42].mxu1 }
 0x5dd   :  { %v1777_v46 = vadd.f32 %v2242_v57, %v1888_v59  ;;  %v1771_v62 = vpop.f32.mrb[43].mxu1 }
 0x5de   :  { %v1772_v60 = vadd.f32 %v1888_v59, %v1771_v62 }
 0x5df   :  { %1812 = vst.msk [vmem:[%s3167_s10 + $0x58] sm:$0xff] %vm1800_vm5, %v1777_v46 }
 0x5e0   :  { %1811 = vst.msk [vmem:[%s3167_s10 + $0x50] sm:$0xff] %vm1800_vm5, %v1772_v60 }
 0x5e4   :  { %v2245_v47 = vpop.f32.mrb[44].mxu1 }
 0x5e5   :  { %v1787_v49 = vadd.f32 %v2245_v47, %v1888_v59  ;;  %v1781_v50 = vpop.f32.mrb[45].mxu1 }
 0x5e6   :  { %v1782_v7 = vadd.f32 %v1888_v59, %v1781_v50 }
 0x5e7   :  { %1814 = vst.msk [vmem:[%s3167_s10 + $0x68] sm:$0xff] %vm1800_vm5, %v1787_v49 }
 0x5e8   :  { %1813 = vst.msk [vmem:[%s3167_s10 + $0x60] sm:$0xff] %vm1800_vm5, %v1782_v7 }
 0x5ec   :  { %v2248_v2 = vpop.f32.mrb[46].mxu1 }
 0x5ed   :  { %v1797_v52 = vadd.f32 %v2248_v2, %v1888_v59  ;;  %v1791_v53 = vpop.f32.mrb[47].mxu1 }
 0x5ee   :  { %v1792_v54 = vadd.f32 %v1888_v59, %v1791_v53 }
 0x5ef   :  { %1816 = vst.msk [vmem:[%s3167_s10 + $0x78] sm:$0xff] %vm1800_vm5, %v1797_v52 }
 0x5f0   :  { %1815 = vst.msk [vmem:[%s3167_s10 + $0x70] sm:$0xff] %vm1800_vm5, %v1792_v54 }

</bundles_post_ra>
